<compile_context>
chip_gen: v7x
topology: tpu7x:2x2x1
jax: 0.10.0
libtpu: 0.0.40
codegen_flags: <defaults>
</compile_context>

<pallas_src>
import functools

import jax
import jax.numpy as jnp
from jax.experimental import pallas as pl
from jax.experimental.pallas import tpu as pltpu

_LANE = 128
_SUBLANE = 8
_VMEM_BUDGET_BYTES = 12 * 1024 * 1024


def _bcast_chunk_kernel(emb_ref, o_ref):
    # emb_ref: (1, C) flat chunk of the positional table (C % 128 == 0).
    # o_ref:   (B, C) same chunk replicated for every batch element.
    o_ref[...] = jnp.broadcast_to(emb_ref[...], o_ref.shape)


def _full_table_kernel(seq_len, emb_ref, o_ref):
    # Fallback path for odd shapes (T*D not a multiple of 128): emb_ref is
    # the whole (max_seq_len, D) table (full-dim block -> always layout
    # legal), o_ref is the full (B, T, D) output.
    o_ref[...] = jnp.broadcast_to(emb_ref[0:seq_len, :][None, :, :], o_ref.shape)


def _pick_chunk_lane_blocks(n_lane_blocks, batch_size, itemsize, budget_bytes):
    """Largest divisor of n_lane_blocks whose VMEM footprint fits the budget."""
    # Per 128-lane block, double-buffered:
    #   input  (1, 128) -> sublane-padded to 8 rows
    #   output (B, 128) -> sublane-padded to ceil(B/8)*8 rows
    padded_b = -(-batch_size // _SUBLANE) * _SUBLANE
    per_block = (2 * _SUBLANE + 2 * padded_b) * _LANE * itemsize
    max_blocks = max(1, budget_bytes // per_block)
    target = int(min(n_lane_blocks, max_blocks))
    for d in range(target, 0, -1):
        if n_lane_blocks % d == 0:
            return d
    return 1


def absolute_positional_embedding(x, embedding_table):
    """x: (B, T) integer ids (values unused, only shape). table: (max_seq_len, D)."""
    batch_size, seq_len = x.shape
    max_seq_len, embedding_dim = embedding_table.shape
    assert seq_len <= max_seq_len, "seq_len must not exceed max_seq_len"
    dtype = embedding_table.dtype

    n = seq_len * embedding_dim  # flat length of one positional slab

    if n % _LANE != 0:
        # TODO(synk): odd shapes (T*D not a multiple of 128) fall back to an
        # untiled whole-table broadcast; correct but not tuned for huge tables.
        return pl.pallas_call(
            functools.partial(_full_table_kernel, seq_len),
            out_shape=jax.ShapeDtypeStruct(
                (batch_size, seq_len, embedding_dim), dtype
            ),
            in_specs=[pl.BlockSpec((max_seq_len, embedding_dim), lambda: (0, 0))],
            out_specs=pl.BlockSpec(
                (batch_size, seq_len, embedding_dim), lambda: (0, 0, 0)
            ),
        )(embedding_table)

    n_lane_blocks = n // _LANE
    itemsize = jnp.dtype(dtype).itemsize
    chunk_blocks = _pick_chunk_lane_blocks(
        n_lane_blocks, batch_size, itemsize, budget_bytes=_VMEM_BUDGET_BYTES
    )
    chunk = chunk_blocks * _LANE
    num_chunks = n // chunk

    # Row-major (max_seq_len, D) flattened: rows [0, T) are the contiguous
    # prefix of length T*D, so chunk c covers flat elements [c*C, (c+1)*C).
    # The reshape of a contiguous array is layout-free.
    flat_table = embedding_table.reshape(1, max_seq_len * embedding_dim)

    out_flat = pl.pallas_call(
        _bcast_chunk_kernel,
        out_shape=jax.ShapeDtypeStruct((batch_size, n), dtype),
        grid_spec=pltpu.PrefetchScalarGridSpec(
            num_scalar_prefetch=0,
            grid=(num_chunks,),
            in_specs=[pl.BlockSpec((1, chunk), lambda c: (0, c))],
            out_specs=pl.BlockSpec((batch_size, chunk), lambda c: (0, c)),
        ),
        compiler_params=pltpu.CompilerParams(
            dimension_semantics=("parallel",),
        ),
    )(flat_table)

    # Contiguous reshape back to (B, T, D).
    return out_flat.reshape(batch_size, seq_len, embedding_dim)


if __name__ == "__main__":
    max_seq_len = 16
    embedding_dim = 32
    batch_size = 2
    seq_len = 8

    key = jax.random.PRNGKey(0)
    k_emb, k_x = jax.random.split(key)

    # Deterministic "nn.Embedding" weight (synthetic, standard-normal init).
    embedding_table = jax.random.normal(
        k_emb, (max_seq_len, embedding_dim), dtype=jnp.float32
    )
    # Token ids; values are irrelevant to the forward (only the shape is used).
    x = jax.random.randint(
        k_x, (batch_size, seq_len), 0, max_seq_len, dtype=jnp.int32
    )

    out = absolute_positional_embedding(x, embedding_table)
    out = jax.block_until_ready(out)

    # Reference check in plain JAX (positions = arange(T) for every batch).
    ref = jnp.broadcast_to(
        embedding_table[:seq_len], (batch_size, seq_len, embedding_dim)
    )
    assert out.shape == (batch_size, seq_len, embedding_dim)
    assert jnp.allclose(out, ref), "mismatch vs reference"

    print("KERNEL_OK")
</pallas_src>

<mosaic_0001>
module attributes {stable_mosaic.version = 11 : i64} {
  func.func @_bcast_chunk_kernel(%arg0: i32, %arg1: memref<1x256xf32, #tpu.memory_space<vmem>>, %arg2: memref<2x256xf32, #tpu.memory_space<vmem>>) attributes {dimension_semantics = [#tpu.dimension_semantics<parallel>], iteration_bounds = array<i64: 1>, scalar_prefetch = 0 : i64, scratch_operands = 0 : i64, tpu.core_type = #tpu.core_type<tc>, window_params = [{transform_indices = @transform_0, window_bounds = array<i64: 1, 256>}, {transform_indices = @transform_1, window_bounds = array<i64: 2, 256>}]} {
    %c0 = arith.constant 0 : index
    %c0_0 = arith.constant 0 : index
    %0 = vector.load %arg1[%c0, %c0_0] : memref<1x256xf32, #tpu.memory_space<vmem>>, vector<1x256xf32>
    %1 = vector.shape_cast %0 : vector<1x256xf32> to vector<1x256xf32>
    %2 = vector.broadcast %1 : vector<1x256xf32> to vector<2x256xf32>
    %c0_1 = arith.constant 0 : index
    %c0_2 = arith.constant 0 : index
    %3 = vector.load %arg2[%c0_1, %c0_2] : memref<2x256xf32, #tpu.memory_space<vmem>>, vector<2x256xf32>
    tpu.vector_store %arg2[%c0_1, %c0_2], %2 {strides = array<i32>} : memref<2x256xf32, #tpu.memory_space<vmem>>, vector<2x256xf32>,
    return
  }
  func.func @transform_0(%arg0: i32) -> (i32, i32) {
    %c0_i32 = arith.constant 0 : i32
    %c0_i32_0 = arith.constant 0 : i32
    return %c0_i32, %arg0 : i32, i32
  }
  func.func @transform_1(%arg0: i32) -> (i32, i32) {
    %c0_i32 = arith.constant 0 : i32
    %c0_i32_0 = arith.constant 0 : i32
    return %c0_i32, %arg0 : i32, i32
  }
}

</mosaic_0001>

<bundles_post_ra>
// kernel: tpu_custom_call.1
= control target key start
LH: loop header
LB: loop body
LE: loop exit
PB: predicated region body
PF: predicated region fallthrough
CT: control target
= control target key end

     0   :  { %6 = vsyncpa [#allocation3], 0  ;;  %s146_s0 = inlined_call_operand.hbm [shape: f32[1,512], index: 0, kind: input, shape index: {}]   ;;  %s147_s1 = inlined_call_operand.hbm [shape: f32[2,256], index: 1, kind: output, shape index: {}]  }
   0x1   :  { %7 = vsyncpa [#allocation4], 0  ;;  %s107_s6 = smov [#allocation2]   ;;  %s59_s10 = scalar_lea.hbm %s146_s0, 32 }
   0x2   :  { %s14_s7 = sshll.u32 %s107_s6, 4  ;;  %p60_p0 = scmp.ne.s32.totalorder %s146_s0, %s59_s10  ;;  %s15_s7 = int_to_ptr.vmem [resolvable:$true] %s14_s7 }
   0x3   :  { %s61_s15 = scalar_lea.hbm %s146_s0, 64  ;;  %p63_p2 = scmp.lt.u32.totalorder %s59_s10, %s146_s0 }
   0x4   :  { %p62_p1 = scmp.lt.u32.totalorder %s61_s15, %s59_s10 }
   0x6   :  { %p64_p3 = por %p63_p2, %p62_p1 }
   0x8   :  { %p65_p4 = pnand %p64_p3, %p60_p0 }
   0xa   :  { %68 = shalt.err (!%p65_p4)
}
   0xb   :  { %s69_s18 = scalar_lea.vmem %s15_s7, 32  ;;  %p74_p6 = scmp.lt.s32.totalorder %s15_s7, %s15_s7 }
   0xc   :  { %p70_p5 = scmp.ne.s32.totalorder %s15_s7, %s69_s18  ;;  %p75_p7 = scmp.lt.s32.totalorder %s69_s18, %s69_s18 }
   0xe   :  { %p76_p8 = por %p75_p7, %p74_p6 }
  0x10   :  { %p77_p9 = pnand %p76_p8, %p70_p5 }
  0x12   :  { %80 = shalt.err (!%p77_p9)
}
  0x13   :  { %17 = dma.hbm_to_vmem [thread:$0]  %s146_s0, 32, %s15_s7, [#allocation3]  }
  0x14   :  { %103 = dma.done.wait [#allocation3], 32  }
  0x15   :  { %104 = vsyncadd [#allocation3], 4294967264  ;;  %v23_v0 = vlaneseq  ;;  %v21_v4 = vld [vmem:[#allocation2] sm:$0x3]  ;;  %s108_s21 = smov [#allocation5]  }
  0x16   :  { %s47_s22 = sshll.u32 %s108_s21, 4  ;;  %s48_s22 = int_to_ptr.vmem [resolvable:$true] %s47_s22 }
  0x17   :  { %v24_v1 = vshrl.u32 %v23_v0, 7  ;;  %s81_s23 = scalar_lea.vmem %s48_s22, 64  ;;  %p86_p11 = scmp.lt.s32.totalorder %s48_s22, %s48_s22 }
  0x18   :  { %p82_p10 = scmp.ne.s32.totalorder %s48_s22, %s81_s23  ;;  %p87_p12 = scmp.lt.s32.totalorder %s81_s23, %s81_s23 }
  0x19   :  { %v25_v2 = vsub.s32 0, %v24_v1  ;;  %v29_v3 = vsub.s32 1, %v24_v1 }
  0x1a   :  { %p88_p13 = por %p87_p12, %p86_p11 }
  0x1b   :  { %v26_v5 = vrot.slane %v21_v4, %v25_v2  ;;  %v30_v6 = vrot.slane %v21_v4, %v29_v3 }
  0x1c   :  { %p89_p0 = pnand %p88_p13, %p82_p10 }
  0x1d   :  { %v31_v7 = vcombine.low %v26_v5, %v30_v6 }
  0x1f   :  { %56 = vst.sshfl [vmem:[#allocation5] sm:$0x33 pattern:$0x76325410] %v31_v7 }
  0x20   :  { %92 = shalt.err (!%p89_p0)
}
  0x21   :  { %s93_s25 = scalar_lea.hbm %s147_s1, 64 }
  0x22   :  { %p94_p1 = scmp.ne.s32.totalorder %s147_s1, %s93_s25  ;;  %p97_p2 = scmp.lt.u32.totalorder %s93_s25, %s147_s1 }
  0x24   :  { %p99_p3 = pnand %p97_p2, %p94_p1 }
  0x26   :  { %102 = shalt.err (!%p99_p3)
}
  0x27   :  { %50 = dma.vmem_to_hbm [thread:$0]  %s48_s22, 64, %s147_s1, [#allocation4]  }
  0x28   :  { %105 = dma.done.wait [#allocation4], 64  }
  0x29   :  { %106 = vsyncadd [#allocation4], 4294967232 }
  0x2a   :  { %54 = vsyncpa [#allocation3], 1 }
  0x2b   :  { %55 = vsyncpa [#allocation4], 1 }

</bundles_post_ra>
